<compile_context>
chip_gen: v7x
topology: tpu7x:2x2x1
jax: 0.10.0
libtpu: 0.0.40
codegen_flags: <defaults>
</compile_context>

<pallas_src>
import functools
import math

import jax
import jax.numpy as jnp
from jax import lax
from jax.experimental import pallas as pl
from jax.experimental.pallas import tpu as pltpu


def prepare_gqa_params(params, *, d_model, n_heads, n_groups):
    """One-time weight re-layout (call outside the hot path).

    Returns per-group weight slabs:
      wq : (G, D, Hg*hd) bf16   (1/sqrt(hd) folded in)
      bq : (G, 1, Hg*hd) f32    (1/sqrt(hd) folded in)
      wk : (G, D, hd)    bf16       bk : (G, 1, hd) f32
      wv : (G, D, hd)    bf16       bv : (G, 1, hd) f32
      wc : (G, Hg*hd, D) bf16       bc : (1, D)     f32
    """
    D = d_model
    hd = d_model // n_heads
    Hg = n_heads // n_groups
    GW = Hg * hd
    scale = 1.0 / math.sqrt(hd)

    wq = (params["wq"] * scale).reshape(D, n_groups, GW).transpose(1, 0, 2)
    bq = (params["bq"] * scale).reshape(n_groups, 1, GW)
    wk = params["wk"].reshape(D, n_groups, hd).transpose(1, 0, 2)
    bk = params["bk"].reshape(n_groups, 1, hd)
    wv = params["wv"].reshape(D, n_groups, hd).transpose(1, 0, 2)
    bv = params["bv"].reshape(n_groups, 1, hd)
    wc = params["wc"].reshape(n_groups, GW, D)
    bc = params["bc"].reshape(1, D)

    return dict(
        wq=wq.astype(jnp.bfloat16), bq=bq.astype(jnp.float32),
        wk=wk.astype(jnp.bfloat16), bk=bk.astype(jnp.float32),
        wv=wv.astype(jnp.bfloat16), bv=bv.astype(jnp.float32),
        wc=wc.astype(jnp.bfloat16), bc=bc.astype(jnp.float32),
    )


def _gqa_kernel(n_heads_group, head_dim,
                q_ref, kg_ref, vg_ref, wq_ref, bq_ref, wc_ref, bc_ref,
                o_ref, qh_sc, m_sc, l_sc, acc_sc):
    """Grid: (batch, q_tiles, groups, kv_tiles); kv is the innermost (flash) axis."""
    g = pl.program_id(2)
    kv = pl.program_id(3)
    hd = head_dim
    Hg = n_heads_group

    @pl.when(kv == 0)
    def _init():
        # Q projection for ALL heads of this group, once per (b, q-tile, group).
        # 1/sqrt(hd) already folded into wq/bq.  Cached in bf16 scratch.
        qh = jnp.dot(q_ref[0], wq_ref[0],
                     preferred_element_type=jnp.float32) + bq_ref[0]   # (Tq, Hg*hd)
        qh_sc[...] = qh.astype(jnp.bfloat16)
        m_sc[...] = jnp.full(m_sc.shape, -jnp.inf, m_sc.dtype)
        l_sc[...] = jnp.zeros(l_sc.shape, l_sc.dtype)
        acc_sc[...] = jnp.zeros(acc_sc.shape, acc_sc.dtype)

    kg = kg_ref[0, 0]          # (kv_tile, hd) bf16, already projected
    vg = vg_ref[0, 0]          # (kv_tile, hd) bf16, already projected

    # Online-softmax update per head; results land directly in scratch so live
    # ranges stay bounded (no Python-list accumulation, no concatenate).
    for hh in range(Hg):       # static, small unrolled loop
        lo = hh * hd
        hi = lo + hd
        qh = qh_sc[:, lo:hi]                                            # (Tq, hd) bf16
        # Contract last dims directly — no explicit .T / XLU transpose of K.
        s = lax.dot_general(qh, kg, (((1,), (1,)), ((), ())),
                            preferred_element_type=jnp.float32)         # (Tq, kv_tile)
        m_prev = m_sc[hh]                                                # (Tq, 1)
        m_new = jnp.maximum(m_prev, jnp.max(s, axis=-1, keepdims=True))
        alpha = jnp.exp(m_prev - m_new)
        p = jnp.exp(s - m_new)                                           # f32 softmax
        l_sc[hh] = alpha * l_sc[hh] + jnp.sum(p, axis=-1, keepdims=True)
        ctx = jnp.dot(p.astype(jnp.bfloat16), vg,
                      preferred_element_type=jnp.float32)                # (Tq, hd)
        acc_sc[:, lo:hi] = alpha * acc_sc[:, lo:hi] + ctx
        m_sc[hh] = m_new

    @pl.when(kv == pl.num_programs(3) - 1)
    def _finalize():
        # Normalize the small (Tq, hd) accumulators (approx reciprocal -> EUP),
        # reuse the qh scratch as the bf16 context slab for this group.
        for hh in range(Hg):
            lo = hh * hd
            hi = lo + hd
            inv_l = pl.reciprocal(l_sc[hh], approx=True)
            qh_sc[:, lo:hi] = (acc_sc[:, lo:hi] * inv_l).astype(jnp.bfloat16)

        # This group's slice of the output projection (contraction K = Hg*hd),
        # accumulated in f32 into the resident output block across the group axis.
        contrib = jnp.dot(qh_sc[...], wc_ref[0],
                          preferred_element_type=jnp.float32)            # (Tq, D)

        @pl.when(g == 0)
        def _first():
            o_ref[0] = contrib + bc_ref[...]

        @pl.when(g != 0)
        def _rest():
            o_ref[0] = o_ref[0] + contrib


def _pick_tile(total, cap):
    """Largest multiple of 8 <= cap dividing `total` (or `total` itself if small)."""
    if total <= cap:
        return total
    t = (cap // 8) * 8
    while t >= 8:
        if total % t == 0:
            return t
        t -= 8
    return total


def group_query_attention(q, k, v, prepared, *, d_model, n_heads, n_groups,
                          q_tile=None, kv_tile=None):
    """q, k, v: (B, T, d_model) float32.  Returns (B, T, d_model) float32."""
    B, T, D = q.shape
    assert D == d_model
    hd = d_model // n_heads
    Hg = n_heads // n_groups
    GW = Hg * hd
    G = n_groups

    # --- tile selection (sized for the tightest-VMEM generation, v7x: 64 MiB) ---
    if q_tile is None:
        q_tile = _pick_tile(T, 256)
        # Guarantee >=2 parallel q-tile steps when B==1 so megacore can split.
        if B == 1 and T // q_tile < 2 and q_tile % 16 == 0:
            q_tile //= 2
    if kv_tile is None:
        kv_tile = _pick_tile(T, 512)
    assert T % q_tile == 0 and (q_tile == T or q_tile % 8 == 0)
    assert T % kv_tile == 0 and (kv_tile == T or kv_tile % 8 == 0)
    num_qt = T // q_tile
    num_kv = T // kv_tile

    # --- hoisted one-shot K/V projections (plain XLA GEMMs), bf16 (B, G, T, hd) ---
    kg = (jnp.einsum("btd,gdh->bgth", k.astype(jnp.bfloat16), prepared["wk"],
                     preferred_element_type=jnp.float32)
          + prepared["bk"][None]).astype(jnp.bfloat16)
    vg = (jnp.einsum("btd,gdh->bgth", v.astype(jnp.bfloat16), prepared["wv"],
                     preferred_element_type=jnp.float32)
          + prepared["bv"][None]).astype(jnp.bfloat16)
    q_bf = q.astype(jnp.bfloat16)

    # --- explicit VMEM budget: double-buffered blocks + persistent scratch ---
    db = 2
    bytes_blocks = db * (
        q_tile * D * 2              # q block (bf16)
        + 2 * kv_tile * hd * 2      # kg + vg tiles (bf16)
        + D * GW * 2 + GW * 4       # wq (bf16) + bq (f32)
        + GW * D * 2 + D * 4        # wc (bf16) + bc (f32)
        + q_tile * D * 4)           # output block (f32)
    bytes_scratch = q_tile * GW * 2 + 2 * Hg * q_tile * 4 + q_tile * GW * 4
    vmem_limit = int(min(max(2 * (bytes_blocks + bytes_scratch), 16 << 20), 64 << 20))

    kernel = functools.partial(_gqa_kernel, Hg, hd)

    out = pl.pallas_call(
        kernel,
        out_shape=jax.ShapeDtypeStruct((B, T, D), jnp.float32),
        grid=(B, num_qt, G, num_kv),
        in_specs=[
            pl.BlockSpec((1, q_tile, D),      lambda b, qt, g, kv: (b, qt, 0)),     # q (bf16)
            pl.BlockSpec((1, 1, kv_tile, hd), lambda b, qt, g, kv: (b, g, kv, 0)),  # projected K
            pl.BlockSpec((1, 1, kv_tile, hd), lambda b, qt, g, kv: (b, g, kv, 0)),  # projected V
            pl.BlockSpec((1, D, GW),          lambda b, qt, g, kv: (g, 0, 0)),      # wq (group g)
            pl.BlockSpec((1, 1, GW),          lambda b, qt, g, kv: (g, 0, 0)),      # bq
            pl.BlockSpec((1, GW, D),          lambda b, qt, g, kv: (g, 0, 0)),      # wc rows, group g
            pl.BlockSpec((1, D),              lambda b, qt, g, kv: (0, 0)),         # bc
        ],
        out_specs=pl.BlockSpec((1, q_tile, D), lambda b, qt, g, kv: (b, qt, 0)),
        scratch_shapes=[
            pltpu.VMEM((q_tile, GW), jnp.bfloat16),     # cached Q heads / bf16 ctx slab
            pltpu.VMEM((Hg, q_tile, 1), jnp.float32),   # running max  (per head)
            pltpu.VMEM((Hg, q_tile, 1), jnp.float32),   # running denom (per head)
            pltpu.VMEM((q_tile, GW), jnp.float32),      # running context accumulator
        ],
        compiler_params=pltpu.CompilerParams(
            dimension_semantics=("parallel", "parallel", "arbitrary", "arbitrary"),
            vmem_limit_bytes=vmem_limit),
    )(q_bf, kg, vg,
      prepared["wq"], prepared["bq"], prepared["wc"], prepared["bc"])
    return out


def reference_gqa(q, k, v, params, *, d_model, n_heads, n_groups):
    """Pure-JAX reference mirroring the (intended) PyTorch forward."""
    head_dim = d_model // n_heads
    n_heads_group = n_heads // n_groups
    B, T, D = q.shape
    qp = q @ params["wq"] + params["bq"]
    kp = k @ params["wk"] + params["bk"]
    vp = v @ params["wv"] + params["bv"]
    qp = qp.reshape(B, T, n_heads, head_dim).transpose(0, 2, 1, 3)
    kp = kp.reshape(B, T, n_groups, head_dim).transpose(0, 2, 1, 3)
    vp = vp.reshape(B, T, n_groups, head_dim).transpose(0, 2, 1, 3)
    kp = jnp.repeat(kp, n_heads_group, axis=1)   # expand() semantics
    vp = jnp.repeat(vp, n_heads_group, axis=1)
    s = (qp @ kp.transpose(0, 1, 3, 2)) / math.sqrt(head_dim)
    attn = jax.nn.softmax(s, axis=-1)
    ctx = (attn @ vp).transpose(0, 2, 1, 3).reshape(B, T, D)
    return ctx @ params["wc"] + params["bc"]


if __name__ == "__main__":
    def run_case(d_model, n_heads, n_groups, B, T, q_tile=None, kv_tile=None, seed=0):
        kv_dim = (d_model // n_heads) * n_groups
        key = jax.random.PRNGKey(seed)
        keys = jax.random.split(key, 11)

        def init(k_, shape, scale=0.1):
            return (scale * jax.random.normal(k_, shape)).astype(jnp.float32)

        params = {
            "wq": init(keys[0], (d_model, d_model)),
            "bq": init(keys[1], (d_model,)),
            "wk": init(keys[2], (d_model, kv_dim)),
            "bk": init(keys[3], (kv_dim,)),
            "wv": init(keys[4], (d_model, kv_dim)),
            "bv": init(keys[5], (kv_dim,)),
            "wc": init(keys[6], (d_model, d_model)),
            "bc": init(keys[7], (d_model,)),
        }
        q = init(keys[8], (B, T, d_model), 1.0)
        k = init(keys[9], (B, T, d_model), 1.0)
        v = init(keys[10], (B, T, d_model), 1.0)

        prepared = prepare_gqa_params(params, d_model=d_model,
                                      n_heads=n_heads, n_groups=n_groups)
        out = group_query_attention(q, k, v, prepared,
                                    d_model=d_model, n_heads=n_heads,
                                    n_groups=n_groups, q_tile=q_tile, kv_tile=kv_tile)
        out = jax.block_until_ready(out)

        ref = reference_gqa(q, k, v, params,
                            d_model=d_model, n_heads=n_heads, n_groups=n_groups)
        assert out.shape == (B, T, d_model)
        # bf16 MXU operands + approx reciprocal => bf16-appropriate tolerance.
        err = float(jnp.max(jnp.abs(out - ref)))
        ref_scale = float(jnp.max(jnp.abs(ref)))
        assert err <= 0.05 * ref_scale + 0.05, \
            f"mismatch vs JAX reference: max|err|={err}, max|ref|={ref_scale}"

    # Small shape matching the spec (single q/kv tile).
    run_case(d_model=32, n_heads=4, n_groups=2, B=2, T=8, seed=0)
    # Exercises the tiled path: multiple q-tiles, multiple kv-tiles (online softmax
    # carry) and cross-group output accumulation, with hd=64.
    run_case(d_model=256, n_heads=4, n_groups=2, B=1, T=128,
             q_tile=64, kv_tile=64, seed=1)
    print("KERNEL_OK")
</pallas_src>

<mosaic_0001>
module attributes {stable_mosaic.version = 11 : i64} {
  func.func @_gqa_kernel(%arg0: i32, %arg1: i32, %arg2: i32, %arg3: i32, %arg4: memref<1x8x32xbf16, #tpu.memory_space<vmem>>, %arg5: memref<1x1x8x8xbf16, #tpu.memory_space<vmem>>, %arg6: memref<1x1x8x8xbf16, #tpu.memory_space<vmem>>, %arg7: memref<1x32x16xbf16, #tpu.memory_space<vmem>>, %arg8: memref<1x1x16xf32, #tpu.memory_space<vmem>>, %arg9: memref<1x16x32xbf16, #tpu.memory_space<vmem>>, %arg10: memref<1x32xf32, #tpu.memory_space<vmem>>, %arg11: memref<1x8x32xf32, #tpu.memory_space<vmem>>, %arg12: memref<8x16xbf16, #tpu.memory_space<vmem>>, %arg13: memref<2x8x1xf32, #tpu.memory_space<vmem>>, %arg14: memref<2x8x1xf32, #tpu.memory_space<vmem>>, %arg15: memref<8x16xf32, #tpu.memory_space<vmem>>) attributes {dimension_semantics = [#tpu.dimension_semantics<parallel>, #tpu.dimension_semantics<parallel>, #tpu.dimension_semantics<arbitrary>, #tpu.dimension_semantics<arbitrary>], iteration_bounds = array<i64: 2, 1, 2, 1>, scalar_prefetch = 0 : i64, scratch_operands = 4 : i64, tpu.core_type = #tpu.core_type<tc>, window_params = [{transform_indices = @transform_0, window_bounds = array<i64: 1, 8, 32>}, {transform_indices = @transform_1, window_bounds = array<i64: 1, 1, 8, 8>}, {transform_indices = @transform_2, window_bounds = array<i64: 1, 1, 8, 8>}, {transform_indices = @transform_3, window_bounds = array<i64: 1, 32, 16>}, {transform_indices = @transform_4, window_bounds = array<i64: 1, 1, 16>}, {transform_indices = @transform_5, window_bounds = array<i64: 1, 16, 32>}, {pipeline_mode = #tpu.pipeline_mode<synchronous>, transform_indices = @transform_6, window_bounds = array<i64: 1, 32>}, {transform_indices = @transform_7, window_bounds = array<i64: 1, 8, 32>}]} {
    %c0_i32 = arith.constant 0 : i32
    %0 = arith.cmpi eq, %arg3, %c0_i32 : i32
    %1 = arith.extui %0 : i1 to i32
    %c0_i32_0 = arith.constant 0 : i32
    %2 = arith.cmpi ne, %1, %c0_i32_0 : i32
    scf.if %2 {
      %c0_51 = arith.constant 0 : index
      %c0_52 = arith.constant 0 : index
      %c0_53 = arith.constant 0 : index
      %72 = vector.load %arg4[%c0_51, %c0_52, %c0_53] : memref<1x8x32xbf16, #tpu.memory_space<vmem>>, vector<1x8x32xbf16>
      %73 = vector.shape_cast %72 : vector<1x8x32xbf16> to vector<8x32xbf16>
      %c0_54 = arith.constant 0 : index
      %c0_55 = arith.constant 0 : index
      %c0_56 = arith.constant 0 : index
      %74 = vector.load %arg7[%c0_54, %c0_55, %c0_56] : memref<1x32x16xbf16, #tpu.memory_space<vmem>>, vector<1x32x16xbf16>
      %75 = vector.shape_cast %74 : vector<1x32x16xbf16> to vector<32x16xbf16>
      %cst_57 = arith.constant dense<0.000000e+00> : vector<8x16xf32>
      %76 = tpu.matmul %73, %75, %cst_57 {dimension_numbers = #tpu.dot_dimension_numbers<[1], [0], [0], [1], [0, 0, 1, 1], [], []>} : vector<8x32xbf16>, vector<32x16xbf16>, vector<8x16xf32> -> vector<8x16xf32>
      %c0_58 = arith.constant 0 : index
      %c0_59 = arith.constant 0 : index
      %c0_60 = arith.constant 0 : index
      %77 = vector.load %arg8[%c0_58, %c0_59, %c0_60] : memref<1x1x16xf32, #tpu.memory_space<vmem>>, vector<1x1x16xf32>
      %78 = vector.shape_cast %77 : vector<1x1x16xf32> to vector<1x16xf32>
      %79 = vector.broadcast %78 : vector<1x16xf32> to vector<8x16xf32>
      %80 = arith.addf %76, %79 : vector<8x16xf32>
      %81 = arith.truncf %80 : vector<8x16xf32> to vector<8x16xbf16>
      %c0_61 = arith.constant 0 : index
      %c0_62 = arith.constant 0 : index
      %82 = vector.load %arg12[%c0_61, %c0_62] : memref<8x16xbf16, #tpu.memory_space<vmem>>, vector<8x16xbf16>
      tpu.vector_store %arg12[%c0_61, %c0_62], %81 {strides = array<i32>} : memref<8x16xbf16, #tpu.memory_space<vmem>>, vector<8x16xbf16>,
      %cst_63 = arith.constant 0xFF800000 : f32
      %83 = vector.broadcast %cst_63 : f32 to vector<2x8x1xf32>
      %c0_64 = arith.constant 0 : index
      %c0_65 = arith.constant 0 : index
      %c0_66 = arith.constant 0 : index
      %84 = vector.load %arg13[%c0_64, %c0_65, %c0_66] : memref<2x8x1xf32, #tpu.memory_space<vmem>>, vector<2x8x1xf32>
      tpu.vector_store %arg13[%c0_64, %c0_65, %c0_66], %83 {strides = array<i32>} : memref<2x8x1xf32, #tpu.memory_space<vmem>>, vector<2x8x1xf32>,
      %cst_67 = arith.constant 0.000000e+00 : f32
      %85 = vector.broadcast %cst_67 : f32 to vector<2x8x1xf32>
      %c0_68 = arith.constant 0 : index
      %c0_69 = arith.constant 0 : index
      %c0_70 = arith.constant 0 : index
      %86 = vector.load %arg14[%c0_68, %c0_69, %c0_70] : memref<2x8x1xf32, #tpu.memory_space<vmem>>, vector<2x8x1xf32>
      tpu.vector_store %arg14[%c0_68, %c0_69, %c0_70], %85 {strides = array<i32>} : memref<2x8x1xf32, #tpu.memory_space<vmem>>, vector<2x8x1xf32>,
      %cst_71 = arith.constant 0.000000e+00 : f32
      %87 = vector.broadcast %cst_71 : f32 to vector<8x16xf32>
      %c0_72 = arith.constant 0 : index
      %c0_73 = arith.constant 0 : index
      %88 = vector.load %arg15[%c0_72, %c0_73] : memref<8x16xf32, #tpu.memory_space<vmem>>, vector<8x16xf32>
      tpu.vector_store %arg15[%c0_72, %c0_73], %87 {strides = array<i32>} : memref<8x16xf32, #tpu.memory_space<vmem>>, vector<8x16xf32>,
    } else {
    }
    %c0 = arith.constant 0 : index
    %c0_1 = arith.constant 0 : index
    %c0_2 = arith.constant 0 : index
    %c0_3 = arith.constant 0 : index
    %3 = vector.load %arg5[%c0, %c0_1, %c0_2, %c0_3] : memref<1x1x8x8xbf16, #tpu.memory_space<vmem>>, vector<1x1x8x8xbf16>
    %4 = vector.shape_cast %3 : vector<1x1x8x8xbf16> to vector<8x8xbf16>
    %c0_4 = arith.constant 0 : index
    %c0_5 = arith.constant 0 : index
    %c0_6 = arith.constant 0 : index
    %c0_7 = arith.constant 0 : index
    %5 = vector.load %arg6[%c0_4, %c0_5, %c0_6, %c0_7] : memref<1x1x8x8xbf16, #tpu.memory_space<vmem>>, vector<1x1x8x8xbf16>
    %6 = vector.shape_cast %5 : vector<1x1x8x8xbf16> to vector<8x8xbf16>
    %c0_8 = arith.constant 0 : index
    %c0_9 = arith.constant 0 : index
    %7 = vector.load %arg12[%c0_8, %c0_9] : memref<8x16xbf16, #tpu.memory_space<vmem>>, vector<8x8xbf16>
    %cst = arith.constant dense<0.000000e+00> : vector<8x8xf32>
    %8 = tpu.matmul %7, %4, %cst {dimension_numbers = #tpu.dot_dimension_numbers<[1], [1], [0], [0], [0, 0, 1, 0], [], []>} : vector<8x8xbf16>, vector<8x8xbf16>, vector<8x8xf32> -> vector<8x8xf32>
    %c0_10 = arith.constant 0 : index
    %c0_11 = arith.constant 0 : index
    %c0_12 = arith.constant 0 : index
    %9 = vector.load %arg13[%c0_10, %c0_11, %c0_12] : memref<2x8x1xf32, #tpu.memory_space<vmem>>, vector<1x8x1xf32>
    %10 = vector.shape_cast %9 : vector<1x8x1xf32> to vector<8x1xf32>
    %cst_13 = arith.constant dense<0xFF800000> : vector<8xf32>
    %11 = vector.multi_reduction <maximumf>, %8, %cst_13 [1] : vector<8x8xf32> to vector<8xf32>
    %12 = vector.shape_cast %11 : vector<8xf32> to vector<8x1xf32>
    %13 = arith.maximumf %10, %12 : vector<8x1xf32>
    %14 = arith.subf %10, %13 : vector<8x1xf32>
    %15 = math.exp %14 : vector<8x1xf32>
    %16 = vector.broadcast %13 : vector<8x1xf32> to vector<8x8xf32>
    %17 = arith.subf %8, %16 : vector<8x8xf32>
    %18 = math.exp %17 : vector<8x8xf32>
    %c0_14 = arith.constant 0 : index
    %c0_15 = arith.constant 0 : index
    %c0_16 = arith.constant 0 : index
    %19 = vector.load %arg14[%c0_14, %c0_15, %c0_16] : memref<2x8x1xf32, #tpu.memory_space<vmem>>, vector<1x8x1xf32>
    %20 = vector.shape_cast %19 : vector<1x8x1xf32> to vector<8x1xf32>
    %21 = arith.mulf %15, %20 : vector<8x1xf32>
    %cst_17 = arith.constant dense<0.000000e+00> : vector<8xf32>
    %22 = vector.multi_reduction <add>, %18, %cst_17 [1] : vector<8x8xf32> to vector<8xf32>
    %23 = vector.shape_cast %22 : vector<8xf32> to vector<8x1xf32>
    %24 = arith.addf %21, %23 : vector<8x1xf32>
    %c0_18 = arith.constant 0 : index
    %c0_19 = arith.constant 0 : index
    %c0_20 = arith.constant 0 : index
    %25 = vector.load %arg14[%c0_18, %c0_19, %c0_20] : memref<2x8x1xf32, #tpu.memory_space<vmem>>, vector<1x8x1xf32>
    %26 = vector.shape_cast %25 : vector<1x8x1xf32> to vector<8x1xf32>
    %27 = vector.shape_cast %24 : vector<8x1xf32> to vector<1x8x1xf32>
    tpu.vector_store %arg14[%c0_18, %c0_19, %c0_20], %27 {strides = array<i32>} : memref<2x8x1xf32, #tpu.memory_space<vmem>>, vector<1x8x1xf32>,
    %28 = arith.truncf %18 : vector<8x8xf32> to vector<8x8xbf16>
    %cst_21 = arith.constant dense<0.000000e+00> : vector<8x8xf32>
    %29 = tpu.matmul %28, %6, %cst_21 {dimension_numbers = #tpu.dot_dimension_numbers<[1], [0], [0], [1], [0, 0, 1, 1], [], []>} : vector<8x8xbf16>, vector<8x8xbf16>, vector<8x8xf32> -> vector<8x8xf32>
    %c0_22 = arith.constant 0 : index
    %c0_23 = arith.constant 0 : index
    %30 = vector.load %arg15[%c0_22, %c0_23] : memref<8x16xf32, #tpu.memory_space<vmem>>, vector<8x8xf32>
    %31 = vector.broadcast %15 : vector<8x1xf32> to vector<8x8xf32>
    %32 = arith.mulf %31, %30 : vector<8x8xf32>
    %33 = arith.addf %32, %29 : vector<8x8xf32>
    %c0_24 = arith.constant 0 : index
    %c0_25 = arith.constant 0 : index
    %34 = vector.load %arg15[%c0_24, %c0_25] : memref<8x16xf32, #tpu.memory_space<vmem>>, vector<8x8xf32>
    tpu.vector_store %arg15[%c0_24, %c0_25], %33 {strides = array<i32>} : memref<8x16xf32, #tpu.memory_space<vmem>>, vector<8x8xf32>,
    %c0_26 = arith.constant 0 : index
    %c0_27 = arith.constant 0 : index
    %c0_28 = arith.constant 0 : index
    %35 = vector.load %arg13[%c0_26, %c0_27, %c0_28] : memref<2x8x1xf32, #tpu.memory_space<vmem>>, vector<1x8x1xf32>
    %36 = vector.shape_cast %35 : vector<1x8x1xf32> to vector<8x1xf32>
    %37 = vector.shape_cast %13 : vector<8x1xf32> to vector<1x8x1xf32>
    tpu.vector_store %arg13[%c0_26, %c0_27, %c0_28], %37 {strides = array<i32>} : memref<2x8x1xf32, #tpu.memory_space<vmem>>, vector<1x8x1xf32>,
    %c0_29 = arith.constant 0 : index
    %c8 = arith.constant 8 : index
    %38 = vector.load %arg12[%c0_29, %c8] : memref<8x16xbf16, #tpu.memory_space<vmem>>, vector<8x8xbf16>
    %cst_30 = arith.constant dense<0.000000e+00> : vector<8x8xf32>
    %39 = tpu.matmul %38, %4, %cst_30 {dimension_numbers = #tpu.dot_dimension_numbers<[1], [1], [0], [0], [0, 0, 1, 0], [], []>} : vector<8x8xbf16>, vector<8x8xbf16>, vector<8x8xf32> -> vector<8x8xf32>
    %c1 = arith.constant 1 : index
    %c0_31 = arith.constant 0 : index
    %c0_32 = arith.constant 0 : index
    %40 = vector.load %arg13[%c1, %c0_31, %c0_32] : memref<2x8x1xf32, #tpu.memory_space<vmem>>, vector<1x8x1xf32>
    %41 = vector.shape_cast %40 : vector<1x8x1xf32> to vector<8x1xf32>
    %cst_33 = arith.constant dense<0xFF800000> : vector<8xf32>
    %42 = vector.multi_reduction <maximumf>, %39, %cst_33 [1] : vector<8x8xf32> to vector<8xf32>
    %43 = vector.shape_cast %42 : vector<8xf32> to vector<8x1xf32>
    %44 = arith.maximumf %41, %43 : vector<8x1xf32>
    %45 = arith.subf %41, %44 : vector<8x1xf32>
    %46 = math.exp %45 : vector<8x1xf32>
    %47 = vector.broadcast %44 : vector<8x1xf32> to vector<8x8xf32>
    %48 = arith.subf %39, %47 : vector<8x8xf32>
    %49 = math.exp %48 : vector<8x8xf32>
    %c1_34 = arith.constant 1 : index
    %c0_35 = arith.constant 0 : index
    %c0_36 = arith.constant 0 : index
    %50 = vector.load %arg14[%c1_34, %c0_35, %c0_36] : memref<2x8x1xf32, #tpu.memory_space<vmem>>, vector<1x8x1xf32>
    %51 = vector.shape_cast %50 : vector<1x8x1xf32> to vector<8x1xf32>
    %52 = arith.mulf %46, %51 : vector<8x1xf32>
    %cst_37 = arith.constant dense<0.000000e+00> : vector<8xf32>
    %53 = vector.multi_reduction <add>, %49, %cst_37 [1] : vector<8x8xf32> to vector<8xf32>
    %54 = vector.shape_cast %53 : vector<8xf32> to vector<8x1xf32>
    %55 = arith.addf %52, %54 : vector<8x1xf32>
    %c1_38 = arith.constant 1 : index
    %c0_39 = arith.constant 0 : index
    %c0_40 = arith.constant 0 : index
    %56 = vector.load %arg14[%c1_38, %c0_39, %c0_40] : memref<2x8x1xf32, #tpu.memory_space<vmem>>, vector<1x8x1xf32>
    %57 = vector.shape_cast %56 : vector<1x8x1xf32> to vector<8x1xf32>
    %58 = vector.shape_cast %55 : vector<8x1xf32> to vector<1x8x1xf32>
    tpu.vector_store %arg14[%c1_38, %c0_39, %c0_40], %58 {strides = array<i32>} : memref<2x8x1xf32, #tpu.memory_space<vmem>>, vector<1x8x1xf32>,
    %59 = arith.truncf %49 : vector<8x8xf32> to vector<8x8xbf16>
    %cst_41 = arith.constant dense<0.000000e+00> : vector<8x8xf32>
    %60 = tpu.matmul %59, %6, %cst_41 {dimension_numbers = #tpu.dot_dimension_numbers<[1], [0], [0], [1], [0, 0, 1, 1], [], []>} : vector<8x8xbf16>, vector<8x8xbf16>, vector<8x8xf32> -> vector<8x8xf32>
    %c0_42 = arith.constant 0 : index
    %c8_43 = arith.constant 8 : index
    %61 = vector.load %arg15[%c0_42, %c8_43] : memref<8x16xf32, #tpu.memory_space<vmem>>, vector<8x8xf32>
    %62 = vector.broadcast %46 : vector<8x1xf32> to vector<8x8xf32>
    %63 = arith.mulf %62, %61 : vector<8x8xf32>
    %64 = arith.addf %63, %60 : vector<8x8xf32>
    %c0_44 = arith.constant 0 : index
    %c8_45 = arith.constant 8 : index
    %65 = vector.load %arg15[%c0_44, %c8_45] : memref<8x16xf32, #tpu.memory_space<vmem>>, vector<8x8xf32>
    tpu.vector_store %arg15[%c0_44, %c8_45], %64 {strides = array<i32>} : memref<8x16xf32, #tpu.memory_space<vmem>>, vector<8x8xf32>,
    %c1_46 = arith.constant 1 : index
    %c0_47 = arith.constant 0 : index
    %c0_48 = arith.constant 0 : index
    %66 = vector.load %arg13[%c1_46, %c0_47, %c0_48] : memref<2x8x1xf32, #tpu.memory_space<vmem>>, vector<1x8x1xf32>
    %67 = vector.shape_cast %66 : vector<1x8x1xf32> to vector<8x1xf32>
    %68 = vector.shape_cast %44 : vector<8x1xf32> to vector<1x8x1xf32>
    tpu.vector_store %arg13[%c1_46, %c0_47, %c0_48], %68 {strides = array<i32>} : memref<2x8x1xf32, #tpu.memory_space<vmem>>, vector<1x8x1xf32>,
    %c0_i32_49 = arith.constant 0 : i32
    %69 = arith.cmpi eq, %arg3, %c0_i32_49 : i32
    %70 = arith.extui %69 : i1 to i32
    %c0_i32_50 = arith.constant 0 : i32
    %71 = arith.cmpi ne, %70, %c0_i32_50 : i32
    scf.if %71 {
      %c0_51 = arith.constant 0 : index
      %c0_52 = arith.constant 0 : index
      %c0_53 = arith.constant 0 : index
      %72 = vector.load %arg14[%c0_51, %c0_52, %c0_53] : memref<2x8x1xf32, #tpu.memory_space<vmem>>, vector<1x8x1xf32>
      %73 = vector.shape_cast %72 : vector<1x8x1xf32> to vector<8x1xf32>
      %74 = tpu.reciprocal %73 {approx = true} : vector<8x1xf32> -> vector<8x1xf32>
      %c0_54 = arith.constant 0 : index
      %c0_55 = arith.constant 0 : index
      %75 = vector.load %arg15[%c0_54, %c0_55] : memref<8x16xf32, #tpu.memory_space<vmem>>, vector<8x8xf32>
      %76 = vector.broadcast %74 : vector<8x1xf32> to vector<8x8xf32>
      %77 = arith.mulf %75, %76 : vector<8x8xf32>
      %78 = arith.truncf %77 : vector<8x8xf32> to vector<8x8xbf16>
      %c0_56 = arith.constant 0 : index
      %c0_57 = arith.constant 0 : index
      %79 = vector.load %arg12[%c0_56, %c0_57] : memref<8x16xbf16, #tpu.memory_space<vmem>>, vector<8x8xbf16>
      tpu.vector_store %arg12[%c0_56, %c0_57], %78 {strides = array<i32>} : memref<8x16xbf16, #tpu.memory_space<vmem>>, vector<8x8xbf16>,
      %c1_58 = arith.constant 1 : index
      %c0_59 = arith.constant 0 : index
      %c0_60 = arith.constant 0 : index
      %80 = vector.load %arg14[%c1_58, %c0_59, %c0_60] : memref<2x8x1xf32, #tpu.memory_space<vmem>>, vector<1x8x1xf32>
      %81 = vector.shape_cast %80 : vector<1x8x1xf32> to vector<8x1xf32>
      %82 = tpu.reciprocal %81 {approx = true} : vector<8x1xf32> -> vector<8x1xf32>
      %c0_61 = arith.constant 0 : index
      %c8_62 = arith.constant 8 : index
      %83 = vector.load %arg15[%c0_61, %c8_62] : memref<8x16xf32, #tpu.memory_space<vmem>>, vector<8x8xf32>
      %84 = vector.broadcast %82 : vector<8x1xf32> to vector<8x8xf32>
      %85 = arith.mulf %83, %84 : vector<8x8xf32>
      %86 = arith.truncf %85 : vector<8x8xf32> to vector<8x8xbf16>
      %c0_63 = arith.constant 0 : index
      %c8_64 = arith.constant 8 : index
      %87 = vector.load %arg12[%c0_63, %c8_64] : memref<8x16xbf16, #tpu.memory_space<vmem>>, vector<8x8xbf16>
      tpu.vector_store %arg12[%c0_63, %c8_64], %86 {strides = array<i32>} : memref<8x16xbf16, #tpu.memory_space<vmem>>, vector<8x8xbf16>,
      %c0_65 = arith.constant 0 : index
      %c0_66 = arith.constant 0 : index
      %88 = vector.load %arg12[%c0_65, %c0_66] : memref<8x16xbf16, #tpu.memory_space<vmem>>, vector<8x16xbf16>
      %c0_67 = arith.constant 0 : index
      %c0_68 = arith.constant 0 : index
      %c0_69 = arith.constant 0 : index
      %89 = vector.load %arg9[%c0_67, %c0_68, %c0_69] : memref<1x16x32xbf16, #tpu.memory_space<vmem>>, vector<1x16x32xbf16>
      %90 = vector.shape_cast %89 : vector<1x16x32xbf16> to vector<16x32xbf16>
      %cst_70 = arith.constant dense<0.000000e+00> : vector<8x32xf32>
      %91 = tpu.matmul %88, %90, %cst_70 {dimension_numbers = #tpu.dot_dimension_numbers<[1], [0], [0], [1], [0, 0, 1, 1], [], []>} : vector<8x16xbf16>, vector<16x32xbf16>, vector<8x32xf32> -> vector<8x32xf32>
      %c0_i32_71 = arith.constant 0 : i32
      %92 = arith.cmpi eq, %arg2, %c0_i32_71 : i32
      %93 = arith.extui %92 : i1 to i32
      %c0_i32_72 = arith.constant 0 : i32
      %94 = arith.cmpi ne, %93, %c0_i32_72 : i32
      scf.if %94 {
        %c0_75 = arith.constant 0 : index
        %c0_76 = arith.constant 0 : index
        %98 = vector.load %arg10[%c0_75, %c0_76] : memref<1x32xf32, #tpu.memory_space<vmem>>, vector<1x32xf32>
        %99 = vector.broadcast %98 : vector<1x32xf32> to vector<8x32xf32>
        %100 = arith.addf %91, %99 : vector<8x32xf32>
        %c0_77 = arith.constant 0 : index
        %c0_78 = arith.constant 0 : index
        %c0_79 = arith.constant 0 : index
        %101 = vector.load %arg11[%c0_77, %c0_78, %c0_79] : memref<1x8x32xf32, #tpu.memory_space<vmem>>, vector<1x8x32xf32>
        %102 = vector.shape_cast %101 : vector<1x8x32xf32> to vector<8x32xf32>
        %103 = vector.shape_cast %100 : vector<8x32xf32> to vector<1x8x32xf32>
        tpu.vector_store %arg11[%c0_77, %c0_78, %c0_79], %103 {strides = array<i32>} : memref<1x8x32xf32, #tpu.memory_space<vmem>>, vector<1x8x32xf32>,
      } else {
      }
      %c0_i32_73 = arith.constant 0 : i32
      %95 = arith.cmpi ne, %arg2, %c0_i32_73 : i32
      %96 = arith.extui %95 : i1 to i32
      %c0_i32_74 = arith.constant 0 : i32
      %97 = arith.cmpi ne, %96, %c0_i32_74 : i32
      scf.if %97 {
        %c0_75 = arith.constant 0 : index
        %c0_76 = arith.constant 0 : index
        %c0_77 = arith.constant 0 : index
        %98 = vector.load %arg11[%c0_75, %c0_76, %c0_77] : memref<1x8x32xf32, #tpu.memory_space<vmem>>, vector<1x8x32xf32>
        %99 = vector.shape_cast %98 : vector<1x8x32xf32> to vector<8x32xf32>
        %100 = arith.addf %99, %91 : vector<8x32xf32>
        %c0_78 = arith.constant 0 : index
        %c0_79 = arith.constant 0 : index
        %c0_80 = arith.constant 0 : index
        %101 = vector.load %arg11[%c0_78, %c0_79, %c0_80] : memref<1x8x32xf32, #tpu.memory_space<vmem>>, vector<1x8x32xf32>
        %102 = vector.shape_cast %101 : vector<1x8x32xf32> to vector<8x32xf32>
        %103 = vector.shape_cast %100 : vector<8x32xf32> to vector<1x8x32xf32>
        tpu.vector_store %arg11[%c0_78, %c0_79, %c0_80], %103 {strides = array<i32>} : memref<1x8x32xf32, #tpu.memory_space<vmem>>, vector<1x8x32xf32>,
      } else {
      }
    } else {
    }
    return
  }
  func.func @transform_0(%arg0: i32, %arg1: i32, %arg2: i32, %arg3: i32) -> (i32, i32, i32) {
    %c0_i32 = arith.constant 0 : i32
    %c0_i32_0 = arith.constant 0 : i32
    return %arg0, %arg1, %c0_i32 : i32, i32, i32
  }
  func.func @transform_1(%arg0: i32, %arg1: i32, %arg2: i32, %arg3: i32) -> (i32, i32, i32, i32) {
    %c0_i32 = arith.constant 0 : i32
    %c0_i32_0 = arith.constant 0 : i32
    return %arg0, %arg2, %arg3, %c0_i32 : i32, i32, i32, i32
  }
  func.func @transform_2(%arg0: i32, %arg1: i32, %arg2: i32, %arg3: i32) -> (i32, i32, i32, i32) {
    %c0_i32 = arith.constant 0 : i32
    %c0_i32_0 = arith.constant 0 : i32
    return %arg0, %arg2, %arg3, %c0_i32 : i32, i32, i32, i32
  }
  func.func @transform_3(%arg0: i32, %arg1: i32, %arg2: i32, %arg3: i32) -> (i32, i32, i32) {
    %c0_i32 = arith.constant 0 : i32
    %c0_i32_0 = arith.constant 0 : i32
    %c0_i32_1 = arith.constant 0 : i32
    return %arg2, %c0_i32, %c0_i32_0 : i32, i32, i32
  }
  func.func @transform_4(%arg0: i32, %arg1: i32, %arg2: i32, %arg3: i32) -> (i32, i32, i32) {
    %c0_i32 = arith.constant 0 : i32
    %c0_i32_0 = arith.constant 0 : i32
    %c0_i32_1 = arith.constant 0 : i32
    return %arg2, %c0_i32, %c0_i32_0 : i32, i32, i32
  }
  func.func @transform_5(%arg0: i32, %arg1: i32, %arg2: i32, %arg3: i32) -> (i32, i32, i32) {
    %c0_i32 = arith.constant 0 : i32
    %c0_i32_0 = arith.constant 0 : i32
    %c0_i32_1 = arith.constant 0 : i32
    return %arg2, %c0_i32, %c0_i32_0 : i32, i32, i32
  }
  func.func @transform_6(%arg0: i32, %arg1: i32, %arg2: i32, %arg3: i32) -> (i32, i32) {
    %c0_i32 = arith.constant 0 : i32
    %c0_i32_0 = arith.constant 0 : i32
    %c0_i32_1 = arith.constant 0 : i32
    return %c0_i32, %c0_i32_0 : i32, i32
  }
  func.func @transform_7(%arg0: i32, %arg1: i32, %arg2: i32, %arg3: i32) -> (i32, i32, i32) {
    %c0_i32 = arith.constant 0 : i32
    %c0_i32_0 = arith.constant 0 : i32
    return %arg0, %arg1, %c0_i32 : i32, i32, i32
  }
}

</mosaic_0001>

<bundles_post_ra>
// kernel: tpu_custom_call.1
= control target key start
LH: loop header
LB: loop body
LE: loop exit
PB: predicated region body
PF: predicated region fallthrough
CT: control target
= control target key end

     0   :  { %12 = vsyncpa [#allocation7], 0  ;;  %s1729_s0 = inlined_call_operand.hbm [shape: bf16[2,8,32], index: 0, kind: input, shape index: {}]   ;;  %s1730_s1 = inlined_call_operand.vmem [shape: bf16[2,2,8,8], index: 1, kind: input, shape index: {}]   ;;  %s1731_s2 = inlined_call_operand.vmem [shape: bf16[2,2,8,8], index: 2, kind: input, shape index: {}]   ;;  %s1732_s3 = inlined_call_operand.vmem [shape: bf16[2,32,16], index: 3, kind: input, shape index: {}]   ;;  %s1733_s4 = inlined_call_operand.vmem [shape: f32[2,1,16], index: 4, kind: input, shape index: {}]   ;;  %s1734_s5 = inlined_call_operand.vmem [shape: bf16[2,16,32], index: 5, kind: input, shape index: {}]   ;;  %s1735_s6 = inlined_call_operand.vmem [shape: f32[1,32], index: 6, kind: input, shape index: {}]   ;;  %s1736_s7 = inlined_call_operand.hbm [shape: f32[2,8,32], index: 7, kind: output, shape index: {}]  }
   0x1   :  { %14 = vsyncpa [#allocation7 + $0x1], 0 }
   0x2   :  { %15 = vsyncpa [#allocation8], 0 }
   0x3   :  { %17 = vsyncpa [#allocation8 + $0x1], 0  ;;  %s1460_s24 = smov 0   ;;  %s1462_s25 = smov 0  }
   0x4   :  { %s1464_s26 = smov 0   ;;  %s1466_s27 = smov 0  }
   0x5   :  { %s1468_s28 = smov 0   ;;  %s1470_s29 = smov 0  }
   0x6   :  { %s1472_s30 = smov 0   ;;  %s1474_s8 = smov 0  }
   0x7 LB: > { %s1092_s9 = sadd.s32 4294967295, %s1410_s8   ;;  %s1093_s10 = sadd.s32 4294967294, %s1410_s8   ;;  %s1410_s8 = sphi %s1474_s8, %s23_s8   ;;  %s1406_s30 = sphi %s1472_s30, %s1758_s30   ;;  %s1402_s29 = sphi %s1470_s29, %s1757_s29   ;;  %s1398_s28 = sphi %s1468_s28, %s1756_s28   ;;  %s1394_s27 = sphi %s1466_s27, %s1755_s27   ;;  %s1390_s26 = sphi %s1464_s26, %s1754_s26   ;;  %s1386_s25 = sphi %s1462_s25, %s1753_s25   ;;  %s1382_s24 = sphi %s1460_s24, %s1752_s24  }
   0x8   : > { %s41_s11 = sadd.s32 1, %s1402_s29  ;;  %s49_s12 = sadd.s32 1, %s1406_s30 }
   0x9   : > { %p43_p0 = scmp.ge.s32.totalorder %s41_s11, 2  ;;  %s58_s13 = sadd.s32 1, %s1390_s26 }
   0xa   : > { %p65_p1 = scmp.ne.s32.totalorder %s1390_s26, %s1386_s25  ;;  %p66_p2 = scmp.eq.s32.totalorder %s1410_s8, 0 }
   0xb   : > { %s1760_s11 = smov (%p43_p0, %s41_s11), 0  ;;  %s1762_s12 = smov (!%p43_p0, %s49_s12), %s1406_s30 }
   0xc   : > { %1739 = sst [smem:[#allocation12_spill]] %s1760_s11  ;;  %p1511_p3 = por %p66_p2, %p65_p1 }
   0xd   : > { %p71_p4 = scmp.ne.s32.totalorder %s1386_s25, %s1382_s24  ;;  %p51_p5 = scmp.ge.s32.totalorder %s1762_s12, 2 }
   0xe   : > { %p72_p6 = scmp.eq.s32.totalorder %s1092_s9, 0  ;;  %p256_p7 = scmp.eq.s32.totalorder %s1092_s9, 3 }
   0xf   : > { %p262_p8 = scmp.eq.s32.totalorder %s1093_s10, 3  ;;  %s1764_s12 = smov (%p51_p5, %s1762_s12), 0 }
  0x10   : > { %1741 = sst [smem:[#allocation13_spill]] %s1764_s12  ;;  %p1519_p9 = por %p72_p6, %p71_p4 }
  0x11   : > { %p1523_p10 = por %p256_p7, %p65_p1  ;;  %s53_s17 = ssub.s32 %s1406_s30, %s1764_s12 }
  0x12   : > { %p1529_p11 = por %p262_p8, %p71_p4  ;;  %p56_p12 = scmp.eq.s32.totalorder %s53_s17, 0 }
  0x13   : > { %s1743_s16 = scalar_select %p1523_p10, 1, 0 }
  0x14   : > { %s1744_s18 = scalar_select %p1529_p11, 1, 0 }
  0x15   : > { %p1192_p13 = scmp.lt.s32.totalorder %s1410_s8, 4  ;;  %s285_s19 = sand.u32 1, %s1390_s26  }
  0x16   : > { %s1536_s20 = scalar_select %p56_p12, %s1390_s26, %s58_s13  }
  0x17   : > { %s1096_s21 = sshll.u32 %s285_s19, 2  ;;  %s1097_s22 = sshll.u32 %s1406_s30, 6 }
  0x18   : > { %s1542_s10 = scalar_lea.hbm %s1729_s0, %s1097_s22  ;;  %s289_s12 = scalar_lea.vmem [#allocation6], %s1096_s21 }
  0x19   : > { %s297_s11 = sshll.u32 %s289_s12, 4  ;;  %p1548_p0 = pnand %p1192_p13, %p1511_p3  ;;  %s1544_s11 = int_to_ptr.vmem [resolvable:$true] %s297_s11 }
  0x1a   : > { %s286_s13 = scalar_lea.sflag [#allocation7], %s285_s19  ;;  %s1282_s22 = scalar_lea.hbm %s1542_s10, 64 }
  0x1b   : > { %p1283_p4 = scmp.ne.s32.totalorder %s1542_s10, %s1282_s22  ;;  %p1284_p5 = pneg %p1548_p0 }
  0x1c   : > { %s1287_s14 = scalar_lea.hbm %s1729_s0, 128  ;;  %p1288_p3 = scmp.lt.u32.totalorder %s1542_s10, %s1729_s0 }
  0x1d   : > { %p1285_p6 = pnand %p1284_p5, %p1283_p4  ;;  %p1289_p8 = scmp.lt.u32.totalorder %s1287_s14, %s1282_s22 }
  0x1e   : > { %p1291_p13 = scmp.lt.u32.totalorder %s1282_s22, %s1542_s10 }
  0x1f   : > { %p1286_p7 = pneg %p1285_p6  ;;  %p1290_p12 = por %p1289_p8, %p1288_p3 }
  0x21   : > { %p1292_p1 = por %p1291_p13, %p1290_p12 }
  0x23   : > { %p1293_p2 = pnand %p1292_p1, %p1286_p7 }
  0x25   : > { %1296 = shalt.err (!%p1293_p2)
}
  0x26   : > { %s1297_s19 = scalar_lea.vmem %s1544_s11, 64  ;;  %s1412_s12 = smov [#allocation6]  }
  0x27   : > { %p1298_p4 = scmp.ne.s32.totalorder %s1544_s11, %s1297_s19  ;;  %s1302_s21 = sshll.u32 %s1412_s12, 4  ;;  %s1303_s21 = int_to_ptr.vmem [resolvable:$false] %s1302_s21 }
  0x28   : > { %s1304_s23 = scalar_lea.vmem %s1303_s21, 128  ;;  %p1305_p10 = scmp.lt.s32.totalorder %s1544_s11, %s1303_s21 }
  0x29   : > { %p1300_p6 = pnand %p1298_p4, %p1284_p5  ;;  %p1306_p3 = scmp.lt.s32.totalorder %s1304_s23, %s1297_s19 }
  0x2b   : > { %p1301_p11 = pneg %p1300_p6  ;;  %p1307_p8 = por %p1306_p3, %p1305_p10 }
  0x2d   : > { %p1308_p12 = pnand %p1307_p8, %p1301_p11 }
  0x2f   : > { %1311 = shalt.err (!%p1308_p12)
}
  0x30   : > { %1187 = dma.hbm_to_vmem [thread:$0]  (!%p1548_p0), %s1542_s10, 64, %s1544_s11, %s286_s13  }
  0x31   : > { %p1746_p1 = scmp.lt.s32.totalorder %s1410_s8, 5  ;;  %p1747_p2 = scmp.ge.s32.totalorder %s1410_s8, 1 }
  0x33   : > { %p353_p5 = pnand %p1747_p2, %p1746_p1 }
  0x34   : > { %s1584_s22 = sand.u32 (!%p353_p5), 1, %s1386_s25  }
  0x35   : > { %356 = sbr.rel (%p353_p5) target bundleno = 1524 (0x5f4), region = 48  ;;  %s1099_s14 = sshll.u32 (!%p353_p5), %s1584_s22, 2 }
  0x36   : > { %s359_s9 = scalar_lea.sflag (!%p353_p5), [#allocation7], %s1584_s22  ;;  %s362_s19 = scalar_lea.vmem (!%p353_p5), [#allocation6], %s1099_s14 }
  0x3c   : > { %1373 = dma.done.wait (%p1519_p9), %s359_s9, 64  }
  0x3d   : > { %1375 = vsyncadd (%p1519_p9), %s359_s9, 4294967232  ;;  %s1100_s11 = sshll.u32 %s1584_s22, 3  ;;  %p430_p10 = scmp.lt.s32.totalorder %s1394_s27, 1  ;;  %v1413_v0 = vmov 0.0   ;;  %vm1414_vm0 = vmmov 0   ;;  %vm492_vm1 = vcmask 261120  }
  0x3e   : > { %1142 = vmatprep.subr.bf16.mxu0 %v1413_v0  ;;  %1146 = vmatprep.mubr.msk.bf16.mxu0 %vm1414_vm0, %v1413_v0  ;;  %v468_v3 = vld [vmem:[%s362_s19] sm:$0xf]  ;;  %p428_p9 = scmp.lt.s32.totalorder %s1398_s28, 1  ;;  %vm549_vm2 = vcmask 64512   ;;  %vm537_vm3 = vcmask 125952   ;;  %vm539_vm4 = vcmask 7168  }
  0x3f   : > { %s1598_s10 = scalar_select %p430_p10, %s1394_s27, 1  ;;  %1150 = vmatprep.subr.bf16.mxu1 %v1413_v0  ;;  %1152 = vmatprep.mubr.msk.bf16.mxu1 %vm1414_vm0, %v1413_v0  ;;  %v1416_v16 = vmov -inf   ;;  %542 = vst.msk [vmem:[#allocation4] sm:$0xff] %vm539_vm4, %v1413_v0  ;;  %543 = vst.msk [vmem:[#allocation4 + $0x8] sm:$0xff] %vm539_vm4, %v1413_v0  ;;  %v1417_v22 = vmov 0   ;;  %vm624_vm5 = vcmask 1043456  }
  0x40   : > { %s429_s21 = scalar_select %p428_p9, %s1398_s28, 1  ;;  %540 = vst.msk [vmem:[#allocation3] sm:$0xff] %vm539_vm4, %v1416_v16  ;;  %541 = vst.msk [vmem:[#allocation3 + $0x8] sm:$0xff] %vm539_vm4, %v1416_v16  ;;  %1264 = vset.pattern.permute.xlu1 %v1417_v22  ;;  %1265 = vset.pattern.permute.xlu0 %v1417_v22  ;;  %vm544_vm6 = vcmask 130048   ;;  %vm808_vm7 = vcmask 130112   ;;  %vm824_vm8 = vcmask 60416  }
  0x41   : > { %s1127_s15 = sshll.u32 %s1598_s10, 4  ;;  %545 = vst.msk [vmem:[#allocation5] sm:$0xff] %vm544_vm6, %v1413_v0  ;;  %vm836_vm9 = vcmask 126016   ;;  %p1120_p11 = scmp.ne.s32.totalorder %s1394_s27, 0 }
  0x42   : > { %s454_s12 = scalar_lea.vmem %s1732_s3, %s1127_s15  ;;  %s1101_s23 = sshll.u32 %s429_s21, 1 }
  0x43   : > { %v1266_v1 = vld [vmem:[%s454_s12] sm:$0xff]   ;;  %v1267_v2 = vld [vmem:[%s454_s12 + $0x8] sm:$0xff]   ;;  %s1615_s14 = sadd.s32 %s1101_s23, %s1598_s10  ;;  %s457_s21 = scalar_lea.vmem %s1733_s4, %s1598_s10 }
  0x44   : > { %1143 = vmatpush3.bf16.msra.mxu0 %v1266_v1  ;;  %s1102_s9 = sshll.u32 %s1615_s14, 2  ;;  %v1109_v6 = vld [vmem:[%s457_s21] ss:$0 sm:$0xff]  ;;  %s1415_s23 = smov 120  }
  0x45   : > { %1144 = vmatprep.subr.bf16.mxu0 %v1413_v0  ;;  %s438_s17 = scalar_lea.vmem %s1730_s1, %s1102_s9  ;;  %s1418_s14 = smov 8  }
  0x46   : > { %v546_v4 = vld [vmem:[%s438_s17] sm:$0xf]  ;;  %s449_s17 = scalar_lea.vmem %s1731_s2, %s1102_s9  ;;  %v612_v54 = vld [vmem:[#allocation4] sm:$0xff]  ;;  %s1128_s9 = sshll.u32 %s1598_s10, 3 }
  0x47   : > { %v554_v5 = vsel %vm549_vm2, %v546_v4, 0  ;;  %v596_v28 = vld [vmem:[#allocation3] sm:$0xff]  ;;  %v547_v32 = vld [vmem:[%s449_s17] sm:$0xf]  ;;  %v728_v34 = vld [vmem:[#allocation3 + $0x8] sm:$0xff]  ;;  %s462_s21 = scalar_lea.vmem %s1734_s5, %s1128_s9  ;;  %s427_s10 = scalar_lea.vmem [#allocation9], %s1100_s11 }
  0x48   : > { %1145 = vmatpush3.bf16.msra.mxu0 %v1267_v2  ;;  %1151 = vmatpush3.bf16.xpose.msra.mxu1 %v554_v5  ;;  %v626_v33 = vsel %vm624_vm5, %v547_v32, 0  ;;  %v745_v62 = vld [vmem:[#allocation4 + $0x8] sm:$0xff] }
  0x49   : > { %1156 = vmatprep.subr.bf16.mxu0 %v1413_v0  ;;  %1162 = vmatprep.subr.bf16.mxu1 %v1413_v0  ;;  %v1121_v32 = vld [vmem:[%s1735_s6] ss:$0 sm:$0xff] (!%p1120_p11) }
  0x4b   : > { %1147 = vmatmul.mubr.msk.bf16.vlgmr.msra.gmra.mrb[0].mxu0 %vm492_vm1, %v468_v3  ;;  %v668_v3 = vld [vmem:[#allocation5] sm:$0xff] }
  0x4c   : > { %1158 = vmatprep.mubr.msk.bf16.mxu0 %vm1414_vm0, %v1413_v0  ;;  %1157 = vmatpush3.bf16.msra.mxu0 %v626_v33 }
  0x4d   : > { %1168 = vmatprep.subr.bf16.mxu0 %v1413_v0 }
 0x11e   : > { %v530_v7 = vpop.f32.mrb[0].mxu0 }
 0x11f   : > { %v531_v8 = vadd.f32 %v1109_v6, %v530_v7  ;;  %v1148_v9 = vpop.f32.mrb[1].mxu0 }
 0x120   : > { %v533_v10 = vpop.f32.mrb[2].mxu0 }
 0x121   : > { %v536_v11 = vpack.c.bf16 %v531_v8, %v531_v8  ;;  %v1149_v12 = vpop.f32.mrb[3].mxu0 }
 0x123   : > { %538 = vst.msk [vmem:[#allocation2] sm:$0xf] %vm537_vm3, %v536_v11 }
 0x12a   : > { %v548_v13 = vld [vmem:[#allocation2] sm:$0xf] }
 0x12b   : > { %v1268_v14 = vld [vmem:[#allocation2] ss:$0 sps:$4 sm:$0xff]   ;;  %1153 = vmatmul.mubr.msk.bf16.vlgmr.msra.gmra.mrb[0].mxu1 %vm549_vm2, %v548_v13 }
 0x12c   : > { %682 = vrot.lane.b32.xlu0 %v1268_v14, %s1415_s23  ;;  %1163 = vmatpush3.bf16.xpose.msra.mxu1 %v554_v5  ;;  %v1269_v14 = vld [vmem:[%s462_s21] sm:$0xff]  }
 0x12d   : > { %1164 = vmatprep.mubr.msk.bf16.mxu1 %vm1414_vm0, %v1413_v0  ;;  %1174 = vmatprep.subr.bf16.mxu1 %v1413_v0 }
 0x19e   : > { %v683_v15 = vpop.permute.xlu0 %682 }
 0x19f   : > { %1165 = vmatmul.mubr.msk.bf16.vlgmr.msra.gmra.mrb[4].mxu1 %vm549_vm2, %v683_v15 }
 0x1a0   : > { %1176 = vmatprep.mubr.msk.bf16.mxu1 %vm1414_vm0, %v1413_v0  ;;  %1175 = vmatpush3.bf16.msra.mxu1 %v1269_v14 }
 0x1fe   : > { %v590_v17 = vpop.f32.mrb[0].mxu1 }
 0x1ff   : > { %v1154_v18 = vpop.f32.mrb[1].mxu1  ;;  %v597_v19 = vsel %vm549_vm2, %v590_v17, -inf }
 0x200   : > { %598 = vmax.xlane.f32.xlu0 %v597_v19  ;;  %v593_v20 = vpop.f32.mrb[2].mxu1 }
 0x201   : > { %v1155_v21 = vpop.f32.mrb[3].mxu1 }
 0x272   : > { %v721_v23 = vpop.f32.mrb[4].mxu1 }
 0x273   : > { %v1166_v24 = vpop.f32.mrb[5].mxu1  ;;  %v729_v25 = vsel %vm549_vm2, %v721_v23, -inf }
 0x274   : > { %730 = vmax.xlane.f32.xlu1 %v729_v25  ;;  %v724_v26 = vpop.f32.mrb[6].mxu1 }
 0x275   : > { %v1167_v27 = vpop.f32.mrb[7].mxu1 }
 0x28d   : > { %v599_v29 = vpop.xlane.xlu0 %598 }
 0x28e   : > { %v600_v30 = vmax.f32 %v596_v28, %v599_v29 }
 0x290   : > { %v601_v31 = vsub.f32 %v596_v28, %v600_v30  ;;  %677 = vst.msk [vmem:[#allocation3] sm:$0xff] %vm539_vm4, %v600_v30  ;;  %606 = vperm.xlu1 %1264, %v600_v30  }
 0x292   : > { %v602_v52 = vmul.f32 1.442695, %v601_v31 }
 0x301   : > { %v731_v35 = vpop.xlane.xlu1 %730 }
 0x302   : > { %v732_v36 = vmax.f32 %v728_v34, %v731_v35 }
 0x304   : > { %810 = vst.msk [vmem:[#allocation3 + $0x8] sm:$0xff] %vm539_vm4, %v732_v36  ;;  %738 = vperm.xlu1 %1264, %v732_v36   ;;  %v733_v42 = vsub.f32 %v728_v34, %v732_v36 }
 0x306   : > { %v734_v44 = vmul.f32 1.442695, %v733_v42 }
 0x30f   : > { %v607_v37 = vpop.permute.xlu1 %606 }
 0x310   : > { %v609_v38 = vsub.f32 %v590_v17, %v607_v37 }
 0x312   : > { %v610_v39 = vmul.f32 1.442695, %v609_v38 }
 0x314   : > { %1270 = vpow2.f32 %v610_v39 }
 0x315   : > { %1272 = vpow2.f32 %v734_v44 }
 0x31e   : > { %v1271_v40 = vpop.eup %1270 }
 0x31f   : > { %v620_v41 = vpack.c.bf16 %v1271_v40, %v1271_v40  ;;  %v614_v43 = vsel %vm549_vm2, %v1271_v40, 0.0  ;;  %v1273_v45 = vpop.eup %1272 }
 0x320   : > { %v746_v63 = vmul.f32 %v1273_v45, %v745_v62 }
 0x321   : > { %1159 = vmatmul.mubr.msk.bf16.vlgmr.msra.gmra.mrb[4].mxu0 %vm549_vm2, %v620_v41 }
 0x322   : > { %1169 = vmatpush3.bf16.msra.mxu0 %v626_v33  ;;  %1170 = vmatprep.mubr.msk.bf16.mxu0 %vm1414_vm0, %v1413_v0 }
 0x328   : > { %615 = vadd.xlane.f32.xlu1 %v614_v43 }
 0x339   : > { %799 = vperm.xlu1 %1264, %v1273_v45  }
 0x383   : > { %v739_v46 = vpop.permute.xlu1 %738 }
 0x384   : > { %v741_v47 = vsub.f32 %v721_v23, %v739_v46 }
 0x386   : > { %v742_v48 = vmul.f32 1.442695, %v741_v47 }
 0x388   : > { %1274 = vpow2.f32 %v742_v48 }
 0x389   : > { %1276 = vpow2.f32 %v602_v52 }
 0x392   : > { %v1275_v49 = vpop.eup %1274 }
 0x393   : > { %v747_v50 = vsel %vm549_vm2, %v1275_v49, 0.0  ;;  %v752_v51 = vpack.c.bf16 %v1275_v49, %v1275_v49  ;;  %v1277_v53 = vpop.eup %1276 }
 0x394   : > { %748 = vadd.xlane.f32.xlu0 %v747_v50  ;;  %v613_v55 = vmul.f32 %v1277_v53, %v612_v54 }
 0x395   : > { %1171 = vmatmul.mubr.msk.bf16.vlgmr.msra.gmra.mrb[8].mxu0 %vm549_vm2, %v752_v51 }
 0x3aa   : > { %671 = vperm.xlu0 %1265, %v1277_v53  }
 0x3b5   : > { %v616_v56 = vpop.xlane.xlu1 %615 }
 0x3b6   : > { %v617_v57 = vadd.f32 %v616_v56, %v613_v55 }
 0x3b8   : > { %619 = vst.msk [vmem:[#allocation4] sm:$0xff] %vm539_vm4, %v617_v57 }
 0x3b9   : > { %v800_v15 = vpop.permute.xlu1 %799 }
 0x3bf   : > { %v814_v8 = vld [vmem:[#allocation4] sm:$0xff] }
 0x3f4   : > { %v662_v58 = vpop.f32.mrb[4].mxu0 }
 0x3f5   : > { %v1160_v59 = vpop.f32.mrb[5].mxu0 }
 0x3f6   : > { %v665_v60 = vpop.f32.mrb[6].mxu0 }
 0x3f7   : > { %v1161_v61 = vpop.f32.mrb[7].mxu0 }
 0x421   : > { %v749_v1 = vpop.xlane.xlu0 %748 }
 0x422   : > { %v750_v2 = vadd.f32 %v749_v1, %v746_v63 }
 0x424   : > { %751 = vst.msk [vmem:[#allocation4 + $0x8] sm:$0xff] %vm539_vm4, %v750_v2 }
 0x429   : > { %v672_v0 = vpop.permute.xlu0 %671 }
 0x42a   : > { %v674_v4 = vmul.f32 %v672_v0, %v668_v3 }
 0x42b   : > { %v826_v5 = vld [vmem:[#allocation4 + $0x8] sm:$0xff] }
 0x42c   : > { %v675_v6 = vadd.f32 %v674_v4, %v662_v58  ;;  %1278 = vrcp.f32 %v826_v5 }
 0x42d   : > { %1280 = vrcp.f32 %v814_v8 }
 0x42e   : > { %676 = vst.msk [vmem:[#allocation5] sm:$0xff] %vm549_vm2, %v675_v6 }
 0x435   : > { %v796_v16 = vld [vmem:[#allocation5] sm:$0xff] }
 0x436   : > { %v1279_v7 = vpop.eup %1278  ;;  %v802_v17 = vmul.f32 %v800_v15, %v796_v16 }
 0x437   : > { %831 = vperm.xlu0 %1265, %v1279_v7   ;;  %v1281_v13 = vpop.eup %1280 }
 0x468   : > { %v790_v9 = vpop.f32.mrb[8].mxu0 }
 0x469   : > { %804 = vrot.lane.b32.xlu1 %v790_v9, %s1418_s14  ;;  %v1172_v10 = vpop.f32.mrb[9].mxu0 }
 0x46a   : > { %v793_v11 = vpop.f32.mrb[10].mxu0 }
 0x46b   : > { %v1173_v12 = vpop.f32.mrb[11].mxu0 }
 0x46d   : > { %819 = vperm.xlu1 %1264, %v1281_v13  }
 0x4b6   : > { %v832_v21 = vpop.permute.xlu0 %831 }
 0x4db   : > { %v805_v18 = vpop.permute.xlu1 %804 }
 0x4dc   : > { %v807_v19 = vadd.f32 %v805_v18, %v802_v17 }
 0x4de   : > { %809 = vst.msk [vmem:[#allocation5] sm:$0xff] %vm808_vm7, %v807_v19 }
 0x4e5   : > { %v828_v20 = vld [vmem:[#allocation5] sm:$0xff] }
 0x4e6   : > { %v834_v22 = vmul.f32 %v832_v21, %v828_v20 }
 0x4e8   : > { %v835_v26 = vpack.c.bf16 %v834_v22, %v834_v22 }
 0x4ec   : > { %v820_v23 = vpop.permute.xlu1 %819 }
 0x4ed   : > { %v822_v24 = vmul.f32 %v828_v20, %v820_v23 }
 0x4ef   : > { %v823_v25 = vpack.c.bf16 %v822_v24, %v822_v24 }
 0x4f1   : > { %825 = vst.msk [vmem:[#allocation2] sm:$0xf] %vm824_vm8, %v823_v25 }
 0x4f2   : > { %837 = vst.msk [vmem:[#allocation2] sm:$0xf] %vm836_vm9, %v835_v26 }
 0x4f9   : > { %v838_v27 = vld [vmem:[#allocation2] sm:$0xf] }
 0x4fa   : > { %1177 = vmatmul.mubr.msk.bf16.vlgmr.msra.gmra.mrb[8].mxu1 %vm544_vm6, %v838_v27 }
 0x5ca   : > { %894 = sbr.rel (%p1120_p11) target bundleno = 1489 (0x5d1), region = 64 }
 0x5cd   : > { %v885_v28 = vpop.f32.mrb[8].mxu1 }
 0x5ce   : > { %v1178_v29 = vpop.f32.mrb[9].mxu1  ;;  %v902_v33 = vadd.f32 (!%p1120_p11), %v1121_v32, %v885_v28 }
 0x5cf   : > { %v888_v30 = vpop.f32.mrb[10].mxu1 }
 0x5d0   : > { %v1179_v31 = vpop.f32.mrb[11].mxu1  ;;  %904 = vst.msk [vmem:[%s427_s10] sm:$0xff] (!%p1120_p11), %vm492_vm1, %v902_v33 }
 0x5d1 PF: > { %p1122_p0 = scmp.eq.s32.totalorder %s1394_s27, 0 }
 0x5d3   : > { %908 = sbr.rel (%p1122_p0) target bundleno = 1499 (0x5db), region = 68 }
 0x5d7   : > { %v909_v34 = vld [vmem:[%s427_s10] sm:$0xff] (!%p1122_p0) }
 0x5d8   : > { %v910_v35 = vadd.f32 (!%p1122_p0), %v909_v34, %v885_v28 }
 0x5da   : > { %912 = vst.msk [vmem:[%s427_s10] sm:$0xff] %vm492_vm1, %v910_v35 }
 0x5db PF: > { %s1124_s11 = sshll.u32 %s1398_s28, 7  ;;  %s928_s9 = sshll.u32 %s427_s10, 4  ;;  %s929_s9 = int_to_ptr.vmem [resolvable:$true] %s928_s9 }
 0x5dc   : > { %s1681_s14 = scalar_lea.hbm %s1736_s7, %s1124_s11  ;;  %s914_s13 = scalar_lea.sflag [#allocation8], %s1584_s22 }
 0x5dd   : > { %s1312_s12 = scalar_lea.vmem %s929_s9, 128  ;;  %p1748_p13 = scmp.ne.s32.totalorder %s1743_s16, 0 }
 0x5de   : > { %p1313_p7 = scmp.ne.s32.totalorder %s929_s9, %s1312_s12  ;;  %s1419_s27 = smov [#allocation9]  }
 0x5df   : > { %s1316_s21 = sshll.u32 %s1419_s27, 4  ;;  %s1317_s21 = int_to_ptr.vmem [resolvable:$false] %s1316_s21 }
 0x5e0   : > { %p1314_p4 = pnand %p1313_p7, %p1748_p13  ;;  %s1318_s23 = scalar_lea.vmem %s1317_s21, 256 }
 0x5e1   : > { %p1319_p3 = scmp.lt.s32.totalorder %s929_s9, %s1317_s21  ;;  %p1320_p8 = scmp.lt.s32.totalorder %s1318_s23, %s1312_s12 }
 0x5e2   : > { %p1315_p6 = pneg %p1314_p4 }
 0x5e3   : > { %p1321_p12 = por %p1320_p8, %p1319_p3 }
 0x5e5   : > { %p1322_p1 = pnand %p1321_p12, %p1315_p6 }
 0x5e7   : > { %1325 = shalt.err (!%p1322_p1)
}
 0x5e8   : > { %s1326_s28 = scalar_lea.hbm %s1681_s14, 128  ;;  %s1330_s15 = scalar_lea.hbm %s1736_s7, 256 }
 0x5e9   : > { %p1327_p2 = scmp.ne.s32.totalorder %s1681_s14, %s1326_s28  ;;  %p1331_p9 = scmp.lt.u32.totalorder %s1681_s14, %s1736_s7 }
 0x5ea   : > { %p1332_p11 = scmp.lt.u32.totalorder %s1330_s15, %s1326_s28  ;;  %p1334_p7 = scmp.lt.u32.totalorder %s1326_s28, %s1681_s14 }
 0x5eb   : > { %p1328_p5 = pnand %p1327_p2, %p1748_p13 }
 0x5ec   : > { %p1333_p0 = por %p1332_p11, %p1331_p9 }
 0x5ed   : > { %p1329_p10 = pneg %p1328_p5 }
 0x5ee   : > { %p1335_p4 = por %p1334_p7, %p1333_p0 }
 0x5f0   : > { %p1336_p6 = pnand %p1335_p4, %p1329_p10 }
 0x5f2   : > { %1339 = shalt.err (!%p1336_p6)
}
 0x5f3   : > { %1182 = dma.vmem_to_hbm [thread:$0]  (%p1748_p13), %s929_s9, 128, %s1681_s14, %s914_s13  }
 0x5f4 PF: > { %p1193_p3 = scmp.ge.s32.totalorder %s1410_s8, 2  ;;  %s940_s17 = sand.u32 1, %s1382_s24  }
 0x5f5   : > { %p1749_p8 = scmp.ne.s32.totalorder %s1744_s18, 0  ;;  %s941_s12 = scalar_lea.sflag [#allocation8], %s940_s17 }
 0x5f7   : > { %p1189_p12 = pnand %p1193_p3, %p1749_p8 }
 0x5f9   : > { %1377 = dma.done.wait (!%p1189_p12), %s941_s12, 128  }
 0x5fa   : > { %1379 = vsyncadd (!%p1189_p12), %s941_s12, 4294967168  ;;  %s23_s8 = sadd.s32 1, %s1410_s8   ;;  %s1750_s16 = sld [smem:[#allocation12_spill]] }
 0x5fb   : > { %p20_p1 = scmp.ge.s32.totalorder %s23_s8, 6   ;;  %s1751_s14 = sld [smem:[#allocation13_spill]] }
 0x5fc   : > { %s1752_s24 = smov %s1386_s25  ;;  %s1753_s25 = smov %s1390_s26 }
 0x5fd   : > { %s1754_s26 = smov %s1536_s20  ;;  %s1755_s27 = smov %s1402_s29 }
 0x5fe   : > { %s1756_s28 = smov %s1406_s30  ;;  %22 = sbr.rel (!%p20_p1) target bundleno = 7 (0x7), region = 126 }
 0x600   : > { %s1757_s29 = smov %s1750_s16 }
 0x601   : > { %s1758_s30 = smov %s1751_s14 }
 0x605   :  { %946 = vsyncpa [#allocation7], 1 }
 0x606   :  { %948 = vsyncpa [#allocation7 + $0x1], 1 }
 0x607   :  { %949 = vsyncpa [#allocation8], 1 }
 0x608   :  { %951 = vsyncpa [#allocation8 + $0x1], 1 }

</bundles_post_ra>
